<compile_context>
chip_gen: v6e
topology: v6e:2x2x1
jax: 0.10.0
libtpu: 0.0.40
codegen_flags: <defaults>
</compile_context>

<pallas_src>
import functools

import jax
import jax.numpy as jnp
from jax.experimental import pallas as pl
from jax.experimental.pallas import tpu as pltpu

NUM_FEATURES = 8
HIDDEN1 = 32
HIDDEN2 = 16
NUM_CLASSES = 20

ROW_PACK = 16                 # original rows packed per lane-dense row (16*8 = 128 lanes)
_MAX_BLOCK_ROWS = 1024        # packed rows per grid step (= 16384 original rows)
_SPLIT_MIN_BATCH = 2048       # only force >=2 grid steps (v7x megacore) above this batch
_PALLAS_MIN_BATCH = 256       # below this, the plain XLA path wins (launch overhead)


def _round_up(n, m):
    return ((n + m - 1) // m) * m


def _block_diag(w, n):
    """(fan_in, fan_out) -> (n*fan_in, n*fan_out) with n copies of w on the diagonal."""
    fan_in, fan_out = w.shape
    eye = jnp.eye(n, dtype=w.dtype)
    bd = eye[:, None, :, None] * w[None, :, None, :]          # (n, fan_in, n, fan_out)
    return bd.reshape(n * fan_in, n * fan_out)


def _mlp_kernel(x_ref, w1_ref, b1_ref, w2_ref, b2_ref, w3_ref, b3_ref, o_ref):
    # One (block_rows, 128) lane-dense tile: 3 fused block-diagonal matmuls.
    # bf16 x bf16 -> f32 accumulate is the native full-rate MXU path; bias add and
    # ReLU stay f32 so v5e's lack of a bf16 VPU is irrelevant.
    x = x_ref[...]                                                       # bf16
    h1 = jnp.dot(x, w1_ref[...], preferred_element_type=jnp.float32) + b1_ref[...]
    h1 = jnp.maximum(h1, 0.0).astype(jnp.bfloat16)
    h2 = jnp.dot(h1, w2_ref[...], preferred_element_type=jnp.float32) + b2_ref[...]
    h2 = jnp.maximum(h2, 0.0).astype(jnp.bfloat16)
    logits = jnp.dot(h2, w3_ref[...], preferred_element_type=jnp.float32) + b3_ref[...]
    # bf16 store: halves the dominant HBM writeback stream; 320 lanes per packed
    # row instead of 20, so stores are (almost entirely) full-lane vst.
    o_ref[...] = logits.astype(o_ref.dtype)


@functools.partial(jax.jit, static_argnames=("block_rows",))
def fingerprint_logits(x, params, block_rows=None):
    """Fused MLP forward.  x: (B, NUM_FEATURES).  Returns (B, NUM_CLASSES) bfloat16."""
    B, F = x.shape
    assert F == NUM_FEATURES
    w1, b1, w2, b2, w3, b3 = params

    # ---- lane-dense weight packing (tiny; in production pack once at load) -----
    w1p = _block_diag(w1, ROW_PACK).astype(jnp.bfloat16)                 # (128, 512)
    w2p = _block_diag(w2, ROW_PACK).astype(jnp.bfloat16)                 # (512, 256)
    w3p = _block_diag(w3, ROW_PACK).astype(jnp.bfloat16)                 # (256, 320)
    b1p = jnp.tile(b1.reshape(1, -1), (1, ROW_PACK)).astype(jnp.float32)  # (1, 512)
    b2p = jnp.tile(b2.reshape(1, -1), (1, ROW_PACK)).astype(jnp.float32)  # (1, 256)
    b3p = jnp.tile(b3.reshape(1, -1), (1, ROW_PACK)).astype(jnp.float32)  # (1, 320)

    # ---- batch tiling -----------------------------------------------------------
    bp_raw = pl.cdiv(B, ROW_PACK)                     # packed rows needed
    if block_rows is None:
        block_rows = min(_MAX_BLOCK_ROWS, bp_raw)
        if B >= _SPLIT_MIN_BATCH:
            # >=2 grid steps so v7x's two TensorCores each take a slice of the
            # "parallel" grid; gated so each slice keeps >= 1024 original rows
            # (on single-TC v5e/v6e the grid is a serial loop, so small batches
            # should not pay an extra ~0.35us pipeline step).
            block_rows = min(block_rows, _round_up(pl.cdiv(bp_raw, 2), 16))
    block_rows = int(block_rows)
    if block_rows < bp_raw:
        block_rows = max(16, _round_up(block_rows, 16))   # bf16 sublane tile = 16
    bp = _round_up(bp_raw, block_rows)
    b_pad = bp * ROW_PACK

    x32 = x.astype(jnp.float32)
    if b_pad != B:
        x32 = jnp.pad(x32, ((0, b_pad - B), (0, 0)))
    # (b_pad, 8) -> (bp, 128): each packed row holds 16 consecutive original rows.
    x_packed = x32.reshape(bp, ROW_PACK * NUM_FEATURES).astype(jnp.bfloat16)

    grid = (bp // block_rows,)

    def whole(arr):
        nd = arr.ndim
        # Constant across the grid (index_map always zeros).
        # TODO(synk): mark these pl.Buffered(1) once single-buffered pipeline_mode
        # is verified on all target jax versions (minor win; avoids risk here).
        return pl.BlockSpec(arr.shape, lambda *i: (0,) * nd)

    flops = 2 * bp * (128 * 512 + 512 * 256 + 256 * 320)
    bytes_accessed = (
        int(x_packed.size) * x_packed.dtype.itemsize
        + sum(int(p.size) * p.dtype.itemsize for p in (w1p, b1p, w2p, b2p, w3p, b3p))
        + bp * ROW_PACK * NUM_CLASSES * 2            # bf16 logits writeback (dominant stream)
    )

    out_packed = pl.pallas_call(
        _mlp_kernel,
        out_shape=jax.ShapeDtypeStruct((bp, ROW_PACK * NUM_CLASSES), jnp.bfloat16),
        grid_spec=pltpu.PrefetchScalarGridSpec(
            num_scalar_prefetch=0,
            grid=grid,
            in_specs=[
                pl.BlockSpec((block_rows, ROW_PACK * NUM_FEATURES), lambda i: (i, 0)),
                whole(w1p), whole(b1p),
                whole(w2p), whole(b2p),
                whole(w3p), whole(b3p),
            ],
            out_specs=pl.BlockSpec((block_rows, ROW_PACK * NUM_CLASSES), lambda i: (i, 0)),
        ),
        compiler_params=pltpu.CompilerParams(
            dimension_semantics=("parallel",),
        ),
        cost_estimate=pl.CostEstimate(
            flops=int(flops), transcendentals=0, bytes_accessed=int(bytes_accessed)
        ),
    )(x_packed, w1p, b1p, w2p, b2p, w3p, b3p)

    # (bp, 320) -> (b_pad, 20) is a free contiguous reshape; drop padding rows.
    return out_packed.reshape(b_pad, NUM_CLASSES)[:B]


def _mlp_reference(x, params):
    """Plain-JAX f32 forward (tiny-batch fallback path)."""
    w1, b1, w2, b2, w3, b3 = params
    h1 = jnp.maximum(x @ w1 + b1, 0.0)
    h2 = jnp.maximum(h1 @ w2 + b2, 0.0)
    return h2 @ w3 + b3


def forward(pixel_values, params, labels=None, use_pallas=None, block_rows=None):
    """Mirrors SimpleFingerprintModel.forward: returns {'loss', 'logits'}.

    Pallas path returns bfloat16 logits (documented contract); the loss upcasts.
    """
    B = pixel_values.shape[0]
    if use_pallas is None:
        use_pallas = B >= _PALLAS_MIN_BATCH
    if use_pallas:
        logits = fingerprint_logits(pixel_values, params, block_rows=block_rows)
    else:
        logits = _mlp_reference(pixel_values.astype(jnp.float32), params)
    loss = None
    if labels is not None:
        logp = jax.nn.log_softmax(logits.astype(jnp.float32), axis=-1)
        loss = -jnp.mean(jnp.take_along_axis(logp, labels[:, None], axis=-1))
    return {"loss": loss, "logits": logits}


def init_params(key):
    """Deterministic init matching the nn.Linear shapes, stored (in, out); biases (1, out)."""
    k1, k2, k3 = jax.random.split(key, 3)

    def linear(k, fan_in, fan_out):
        bound = 1.0 / jnp.sqrt(fan_in)
        kw, kb = jax.random.split(k)
        w = jax.random.uniform(kw, (fan_in, fan_out), jnp.float32, -bound, bound)
        b = jax.random.uniform(kb, (1, fan_out), jnp.float32, -bound, bound)
        return w, b

    w1, b1 = linear(k1, NUM_FEATURES, HIDDEN1)
    w2, b2 = linear(k2, HIDDEN1, HIDDEN2)
    w3, b3 = linear(k3, HIDDEN2, NUM_CLASSES)
    return (w1, b1, w2, b2, w3, b3)


if __name__ == "__main__":
    key = jax.random.PRNGKey(0)
    k_x, k_lbl, k_params = jax.random.split(key, 3)

    # Small demo batch; packs to (16, 128) lane-dense rows -> a single full-lane tile.
    B = 256
    x = jax.random.normal(k_x, (B, NUM_FEATURES), jnp.float32)
    labels = jax.random.randint(k_lbl, (B,), 0, NUM_CLASSES)
    params = init_params(k_params)

    # Force the Pallas path so the kernel itself is what runs here.
    out = forward(x, params, labels=labels, use_pallas=True)
    logits = jax.block_until_ready(out["logits"]).astype(jnp.float32)
    loss = jax.block_until_ready(out["loss"])

    # Reference mirrors the kernel's bf16 contract (bf16 x/weights/activations into
    # the MXU, f32 accumulate), so the tolerance only covers rounding order plus the
    # final bf16 logits cast.
    def bf16_ref(xv, ps):
        w1, b1, w2, b2, w3, b3 = ps
        bf = lambda a: a.astype(jnp.bfloat16)
        h1 = jnp.maximum(jnp.dot(bf(xv), bf(w1), preferred_element_type=jnp.float32) + b1, 0.0)
        h2 = jnp.maximum(jnp.dot(bf(h1), bf(w2), preferred_element_type=jnp.float32) + b2, 0.0)
        return jnp.dot(bf(h2), bf(w3), preferred_element_type=jnp.float32) + b3

    ref_logits = bf16_ref(x, params)
    assert logits.shape == (B, NUM_CLASSES)
    max_err = float(jnp.max(jnp.abs(logits - ref_logits)))
    assert jnp.allclose(logits, ref_logits, atol=3e-2, rtol=3e-2), max_err
    assert jnp.isfinite(loss)

    print("KERNEL_OK")
</pallas_src>

<mosaic_0001>
module attributes {stable_mosaic.version = 11 : i64} {
  func.func @_mlp_kernel(%arg0: i32, %arg1: memref<16x128xbf16, #tpu.memory_space<vmem>>, %arg2: memref<128x512xbf16, #tpu.memory_space<vmem>>, %arg3: memref<1x512xf32, #tpu.memory_space<vmem>>, %arg4: memref<512x256xbf16, #tpu.memory_space<vmem>>, %arg5: memref<1x256xf32, #tpu.memory_space<vmem>>, %arg6: memref<256x320xbf16, #tpu.memory_space<vmem>>, %arg7: memref<1x320xf32, #tpu.memory_space<vmem>>, %arg8: memref<16x320xbf16, #tpu.memory_space<vmem>>) attributes {dimension_semantics = [#tpu.dimension_semantics<parallel>], iteration_bounds = array<i64: 1>, scalar_prefetch = 0 : i64, scratch_operands = 0 : i64, tpu.core_type = #tpu.core_type<tc>, window_params = [{transform_indices = @transform_0, window_bounds = array<i64: 16, 128>}, {pipeline_mode = #tpu.pipeline_mode<synchronous>, transform_indices = @transform_1, window_bounds = array<i64: 128, 512>}, {pipeline_mode = #tpu.pipeline_mode<synchronous>, transform_indices = @transform_2, window_bounds = array<i64: 1, 512>}, {pipeline_mode = #tpu.pipeline_mode<synchronous>, transform_indices = @transform_3, window_bounds = array<i64: 512, 256>}, {pipeline_mode = #tpu.pipeline_mode<synchronous>, transform_indices = @transform_4, window_bounds = array<i64: 1, 256>}, {pipeline_mode = #tpu.pipeline_mode<synchronous>, transform_indices = @transform_5, window_bounds = array<i64: 256, 320>}, {pipeline_mode = #tpu.pipeline_mode<synchronous>, transform_indices = @transform_6, window_bounds = array<i64: 1, 320>}, {transform_indices = @transform_7, window_bounds = array<i64: 16, 320>}]} {
    %c0 = arith.constant 0 : index
    %c0_0 = arith.constant 0 : index
    %0 = vector.load %arg1[%c0, %c0_0] : memref<16x128xbf16, #tpu.memory_space<vmem>>, vector<16x128xbf16>
    %c0_1 = arith.constant 0 : index
    %c0_2 = arith.constant 0 : index
    %1 = vector.load %arg2[%c0_1, %c0_2] : memref<128x512xbf16, #tpu.memory_space<vmem>>, vector<128x512xbf16>
    %cst = arith.constant dense<0.000000e+00> : vector<16x512xf32>
    %2 = tpu.matmul %0, %1, %cst {dimension_numbers = #tpu.dot_dimension_numbers<[1], [0], [0], [1], [0, 0, 1, 1], [], []>} : vector<16x128xbf16>, vector<128x512xbf16>, vector<16x512xf32> -> vector<16x512xf32>
    %c0_3 = arith.constant 0 : index
    %c0_4 = arith.constant 0 : index
    %3 = vector.load %arg3[%c0_3, %c0_4] : memref<1x512xf32, #tpu.memory_space<vmem>>, vector<1x512xf32>
    %4 = vector.broadcast %3 : vector<1x512xf32> to vector<16x512xf32>
    %5 = arith.addf %2, %4 : vector<16x512xf32>
    %cst_5 = arith.constant 0.000000e+00 : f32
    %6 = vector.broadcast %cst_5 : f32 to vector<16x512xf32>
    %7 = arith.maximumf %5, %6 : vector<16x512xf32>
    %8 = arith.truncf %7 : vector<16x512xf32> to vector<16x512xbf16>
    %c0_6 = arith.constant 0 : index
    %c0_7 = arith.constant 0 : index
    %9 = vector.load %arg4[%c0_6, %c0_7] : memref<512x256xbf16, #tpu.memory_space<vmem>>, vector<512x256xbf16>
    %cst_8 = arith.constant dense<0.000000e+00> : vector<16x256xf32>
    %10 = tpu.matmul %8, %9, %cst_8 {dimension_numbers = #tpu.dot_dimension_numbers<[1], [0], [0], [1], [0, 0, 1, 1], [], []>} : vector<16x512xbf16>, vector<512x256xbf16>, vector<16x256xf32> -> vector<16x256xf32>
    %c0_9 = arith.constant 0 : index
    %c0_10 = arith.constant 0 : index
    %11 = vector.load %arg5[%c0_9, %c0_10] : memref<1x256xf32, #tpu.memory_space<vmem>>, vector<1x256xf32>
    %12 = vector.broadcast %11 : vector<1x256xf32> to vector<16x256xf32>
    %13 = arith.addf %10, %12 : vector<16x256xf32>
    %cst_11 = arith.constant 0.000000e+00 : f32
    %14 = vector.broadcast %cst_11 : f32 to vector<16x256xf32>
    %15 = arith.maximumf %13, %14 : vector<16x256xf32>
    %16 = arith.truncf %15 : vector<16x256xf32> to vector<16x256xbf16>
    %c0_12 = arith.constant 0 : index
    %c0_13 = arith.constant 0 : index
    %17 = vector.load %arg6[%c0_12, %c0_13] : memref<256x320xbf16, #tpu.memory_space<vmem>>, vector<256x320xbf16>
    %cst_14 = arith.constant dense<0.000000e+00> : vector<16x320xf32>
    %18 = tpu.matmul %16, %17, %cst_14 {dimension_numbers = #tpu.dot_dimension_numbers<[1], [0], [0], [1], [0, 0, 1, 1], [], []>} : vector<16x256xbf16>, vector<256x320xbf16>, vector<16x320xf32> -> vector<16x320xf32>
    %c0_15 = arith.constant 0 : index
    %c0_16 = arith.constant 0 : index
    %19 = vector.load %arg7[%c0_15, %c0_16] : memref<1x320xf32, #tpu.memory_space<vmem>>, vector<1x320xf32>
    %20 = vector.broadcast %19 : vector<1x320xf32> to vector<16x320xf32>
    %21 = arith.addf %18, %20 : vector<16x320xf32>
    %22 = arith.truncf %21 : vector<16x320xf32> to vector<16x320xbf16>
    %c0_17 = arith.constant 0 : index
    %c0_18 = arith.constant 0 : index
    %23 = vector.load %arg8[%c0_17, %c0_18] : memref<16x320xbf16, #tpu.memory_space<vmem>>, vector<16x320xbf16>
    tpu.vector_store %arg8[%c0_17, %c0_18], %22 {strides = array<i32>} : memref<16x320xbf16, #tpu.memory_space<vmem>>, vector<16x320xbf16>,
    return
  }
  func.func @transform_0(%arg0: i32) -> (i32, i32) {
    %c0_i32 = arith.constant 0 : i32
    %c0_i32_0 = arith.constant 0 : i32
    return %arg0, %c0_i32 : i32, i32
  }
  func.func @transform_1(%arg0: i32) -> (i32, i32) {
    %c0_i32 = arith.constant 0 : i32
    %c0_i32_0 = arith.constant 0 : i32
    %c0_i32_1 = arith.constant 0 : i32
    return %c0_i32, %c0_i32_0 : i32, i32
  }
  func.func @transform_2(%arg0: i32) -> (i32, i32) {
    %c0_i32 = arith.constant 0 : i32
    %c0_i32_0 = arith.constant 0 : i32
    %c0_i32_1 = arith.constant 0 : i32
    return %c0_i32, %c0_i32_0 : i32, i32
  }
  func.func @transform_3(%arg0: i32) -> (i32, i32) {
    %c0_i32 = arith.constant 0 : i32
    %c0_i32_0 = arith.constant 0 : i32
    %c0_i32_1 = arith.constant 0 : i32
    return %c0_i32, %c0_i32_0 : i32, i32
  }
  func.func @transform_4(%arg0: i32) -> (i32, i32) {
    %c0_i32 = arith.constant 0 : i32
    %c0_i32_0 = arith.constant 0 : i32
    %c0_i32_1 = arith.constant 0 : i32
    return %c0_i32, %c0_i32_0 : i32, i32
  }
  func.func @transform_5(%arg0: i32) -> (i32, i32) {
    %c0_i32 = arith.constant 0 : i32
    %c0_i32_0 = arith.constant 0 : i32
    %c0_i32_1 = arith.constant 0 : i32
    return %c0_i32, %c0_i32_0 : i32, i32
  }
  func.func @transform_6(%arg0: i32) -> (i32, i32) {
    %c0_i32 = arith.constant 0 : i32
    %c0_i32_0 = arith.constant 0 : i32
    %c0_i32_1 = arith.constant 0 : i32
    return %c0_i32, %c0_i32_0 : i32, i32
  }
  func.func @transform_7(%arg0: i32) -> (i32, i32) {
    %c0_i32 = arith.constant 0 : i32
    %c0_i32_0 = arith.constant 0 : i32
    return %arg0, %c0_i32 : i32, i32
  }
}

</mosaic_0001>

<bundles_post_ra>
// kernel: fingerprint_logits.1
= control target key start
LH: loop header
LB: loop body
LE: loop exit
PB: predicated region body
PF: predicated region fallthrough
CT: control target
= control target key end

     0   :  { %v1670_v1 = vmov 0   ;;  %vm1277_vm0 = vcmask 519168   ;;  %s2187_s1 = inlined_call_operand.vmem [shape: bf16[128,512], index: 1, kind: input, shape index: {}]   ;;  %s2188_s0 = inlined_call_operand.vmem [shape: bf16[16,128], index: 0, kind: input, shape index: {}]   ;;  %s2189_s3 = inlined_call_operand.vmem [shape: bf16[512,256], index: 3, kind: input, shape index: {}]   ;;  %s2190_s5 = inlined_call_operand.vmem [shape: bf16[256,320], index: 5, kind: input, shape index: {}]   ;;  %s2191_s2 = inlined_call_operand.vmem [shape: f32[1,512], index: 2, kind: input, shape index: {}]   ;;  %s2192_s4 = inlined_call_operand.vmem [shape: f32[1,256], index: 4, kind: input, shape index: {}]   ;;  %s2193_s6 = inlined_call_operand.vmem [shape: f32[1,320], index: 6, kind: input, shape index: {}]   ;;  %s2194_s7 = inlined_call_operand.vmem [shape: bf16[16,320], index: 7, kind: output, shape index: {}]  }
   0x1   :  { %v1461_v0 = vld [vmem:[%s2187_s1 + $0xe4] ss:$16 sps:$4 sm:$0xff]   ;;  %281 = vmatprep.mubr.bf16.mxu0 %v1670_v1  ;;  %324 = vmatprep.mubr.bf16.mxu1 %v1670_v1  ;;  %v1463_v2 = vld [vmem:[%s2187_s1 + $0xec] ss:$16 sps:$4 sm:$0xff]   ;;  %v1465_v3 = vld [vmem:[%s2187_s1 + $0xe0] ss:$16 sps:$4 sm:$0xff]  }
   0x2   :  { %249 = vmatprep.subr.bf16.mxu0 %v1461_v0  ;;  %v1466_v4 = vld [vmem:[%s2187_s1 + $0xe8] ss:$16 sps:$4 sm:$0xff]   ;;  %292 = vmatprep.subr.bf16.mxu1 %v1463_v2  ;;  %v1467_v5 = vld [vmem:[%s2187_s1 + $0xc4] ss:$16 sps:$4 sm:$0xff]   ;;  %v1469_v6 = vld [vmem:[%s2187_s1 + $0xcc] ss:$16 sps:$4 sm:$0xff]  }
   0x3   :  { %250 = vmatpush1.bf16.msra.mxu0 %v1465_v3  ;;  %293 = vmatpush1.bf16.msra.mxu1 %v1466_v4  ;;  %v1471_v7 = vld [vmem:[%s2187_s1 + $0xc0] ss:$16 sps:$4 sm:$0xff]   ;;  %v1472_v8 = vld [vmem:[%s2187_s1 + $0xc8] ss:$16 sps:$4 sm:$0xff]   ;;  %v1473_v9 = vld [vmem:[%s2187_s1 + $0xa4] ss:$16 sps:$4 sm:$0xff]  }
   0x4   :  { %251 = vmatprep.subr.bf16.mxu0 %v1467_v5  ;;  %294 = vmatprep.subr.bf16.mxu1 %v1469_v6  ;;  %v1475_v10 = vld [vmem:[%s2187_s1 + $0xac] ss:$16 sps:$4 sm:$0xff]   ;;  %v1477_v11 = vld [vmem:[%s2187_s1 + $0xa0] ss:$16 sps:$4 sm:$0xff]   ;;  %v1478_v12 = vld [vmem:[%s2187_s1 + $0xa8] ss:$16 sps:$4 sm:$0xff]  }
   0x5   :  { %v1479_v13 = vld [vmem:[%s2187_s1 + $0x84] ss:$16 sps:$4 sm:$0xff]   ;;  %v1481_v14 = vld [vmem:[%s2187_s1 + $0x8c] ss:$16 sps:$4 sm:$0xff]   ;;  %v1483_v15 = vld [vmem:[%s2187_s1 + $0x80] ss:$16 sps:$4 sm:$0xff]  }
   0x6   :  { %v1484_v16 = vld [vmem:[%s2187_s1 + $0x88] ss:$16 sps:$4 sm:$0xff]   ;;  %v1485_v17 = vld [vmem:[%s2187_s1 + $0x64] ss:$16 sps:$4 sm:$0xff]   ;;  %v1487_v18 = vld [vmem:[%s2187_s1 + $0x6c] ss:$16 sps:$4 sm:$0xff]  }
   0x7   :  { %252 = vmatpush1.bf16.msra.mxu0 %v1471_v7  ;;  %295 = vmatpush1.bf16.msra.mxu1 %v1472_v8  ;;  %v1489_v19 = vld [vmem:[%s2187_s1 + $0x60] ss:$16 sps:$4 sm:$0xff]   ;;  %v1490_v20 = vld [vmem:[%s2187_s1 + $0x68] ss:$16 sps:$4 sm:$0xff]   ;;  %v1491_v21 = vld [vmem:[%s2187_s1 + $0x44] ss:$16 sps:$4 sm:$0xff]  }
   0x8   :  { %253 = vmatprep.subr.bf16.mxu0 %v1473_v9  ;;  %296 = vmatprep.subr.bf16.mxu1 %v1475_v10  ;;  %v1493_v22 = vld [vmem:[%s2187_s1 + $0x4c] ss:$16 sps:$4 sm:$0xff]   ;;  %v1495_v23 = vld [vmem:[%s2187_s1 + $0x40] ss:$16 sps:$4 sm:$0xff]   ;;  %v1496_v24 = vld [vmem:[%s2187_s1 + $0x48] ss:$16 sps:$4 sm:$0xff]  }
   0x9   :  { %v1497_v25 = vld [vmem:[%s2187_s1 + $0x24] ss:$16 sps:$4 sm:$0xff]   ;;  %v1499_v26 = vld [vmem:[%s2187_s1 + $0x2c] ss:$16 sps:$4 sm:$0xff]   ;;  %v1501_v27 = vld [vmem:[%s2187_s1 + $0x20] ss:$16 sps:$4 sm:$0xff]  }
   0xa   :  { %v1502_v28 = vld [vmem:[%s2187_s1 + $0x28] ss:$16 sps:$4 sm:$0xff]   ;;  %v1503_v29 = vld [vmem:[%s2187_s1 + $0x4] ss:$16 sps:$4 sm:$0xff]   ;;  %v1505_v30 = vld [vmem:[%s2187_s1 + $0xc] ss:$16 sps:$4 sm:$0xff]  }
   0xb   :  { %254 = vmatpush1.bf16.msra.mxu0 %v1477_v11  ;;  %297 = vmatpush1.bf16.msra.mxu1 %v1478_v12  ;;  %v1507_v31 = vld [vmem:[%s2187_s1] ss:$16 sps:$4 sm:$0xff]   ;;  %v1508_v32 = vld [vmem:[%s2187_s1 + $0x8] ss:$16 sps:$4 sm:$0xff]   ;;  %v1512_v33 = vld [vmem:[%s2189_s3 + $0x74] ss:$8 sps:$4 sm:$0xff]  }
   0xc   :  { %255 = vmatprep.subr.bf16.mxu0 %v1479_v13  ;;  %298 = vmatprep.subr.bf16.mxu1 %v1481_v14  ;;  %v1515_v34 = vld [vmem:[%s2189_s3 + $0x174] ss:$8 sps:$4 sm:$0xff]   ;;  %v1509_v35 = vld [vmem:[%s2188_s0] sm:$0xff]   ;;  %v1510_v36 = vld [vmem:[%s2189_s3 + $0x70] ss:$8 sps:$4 sm:$0xff]  }
   0xd   :  { %v1513_v37 = vld [vmem:[%s2189_s3 + $0x170] ss:$8 sps:$4 sm:$0xff]   ;;  %v1518_v38 = vld [vmem:[%s2189_s3 + $0x64] ss:$8 sps:$4 sm:$0xff]   ;;  %v1516_v40 = vld [vmem:[%s2189_s3 + $0x60] ss:$8 sps:$4 sm:$0xff]  }
   0xe   :  { %v1521_v39 = vld [vmem:[%s2189_s3 + $0x164] ss:$8 sps:$4 sm:$0xff]   ;;  %v1519_v41 = vld [vmem:[%s2189_s3 + $0x160] ss:$8 sps:$4 sm:$0xff]   ;;  %v1524_v42 = vld [vmem:[%s2189_s3 + $0x54] ss:$8 sps:$4 sm:$0xff]  }
   0xf   :  { %256 = vmatpush1.bf16.msra.mxu0 %v1483_v15  ;;  %299 = vmatpush1.bf16.msra.mxu1 %v1484_v16  ;;  %v1527_v43 = vld [vmem:[%s2189_s3 + $0x154] ss:$8 sps:$4 sm:$0xff]   ;;  %v1522_v44 = vld [vmem:[%s2189_s3 + $0x50] ss:$8 sps:$4 sm:$0xff]   ;;  %v1530_v46 = vld [vmem:[%s2189_s3 + $0x44] ss:$8 sps:$4 sm:$0xff]  }
  0x10   :  { %257 = vmatprep.subr.bf16.mxu0 %v1485_v17  ;;  %300 = vmatprep.subr.bf16.mxu1 %v1487_v18  ;;  %v1525_v45 = vld [vmem:[%s2189_s3 + $0x150] ss:$8 sps:$4 sm:$0xff]   ;;  %v1533_v47 = vld [vmem:[%s2189_s3 + $0x144] ss:$8 sps:$4 sm:$0xff]   ;;  %v1528_v48 = vld [vmem:[%s2189_s3 + $0x40] ss:$8 sps:$4 sm:$0xff]  }
  0x11   :  { %v1531_v49 = vld [vmem:[%s2189_s3 + $0x140] ss:$8 sps:$4 sm:$0xff]   ;;  %v1536_v50 = vld [vmem:[%s2189_s3 + $0x34] ss:$8 sps:$4 sm:$0xff]   ;;  %v1534_v52 = vld [vmem:[%s2189_s3 + $0x30] ss:$8 sps:$4 sm:$0xff]  }
  0x12   :  { %v1539_v51 = vld [vmem:[%s2189_s3 + $0x134] ss:$8 sps:$4 sm:$0xff]   ;;  %v1537_v53 = vld [vmem:[%s2189_s3 + $0x130] ss:$8 sps:$4 sm:$0xff]   ;;  %v1542_v54 = vld [vmem:[%s2189_s3 + $0x24] ss:$8 sps:$4 sm:$0xff]  }
  0x13   :  { %258 = vmatpush1.bf16.msra.mxu0 %v1489_v19  ;;  %301 = vmatpush1.bf16.msra.mxu1 %v1490_v20  ;;  %v1545_v55 = vld [vmem:[%s2189_s3 + $0x124] ss:$8 sps:$4 sm:$0xff]   ;;  %v1540_v56 = vld [vmem:[%s2189_s3 + $0x20] ss:$8 sps:$4 sm:$0xff]   ;;  %v1548_v58 = vld [vmem:[%s2189_s3 + $0x14] ss:$8 sps:$4 sm:$0xff]  }
  0x14   :  { %259 = vmatprep.subr.bf16.mxu0 %v1491_v21  ;;  %302 = vmatprep.subr.bf16.mxu1 %v1493_v22  ;;  %v1543_v57 = vld [vmem:[%s2189_s3 + $0x120] ss:$8 sps:$4 sm:$0xff]   ;;  %v1551_v59 = vld [vmem:[%s2189_s3 + $0x114] ss:$8 sps:$4 sm:$0xff]   ;;  %v1546_v60 = vld [vmem:[%s2189_s3 + $0x10] ss:$8 sps:$4 sm:$0xff]  }
  0x15   :  { %v1549_v61 = vld [vmem:[%s2189_s3 + $0x110] ss:$8 sps:$4 sm:$0xff]   ;;  %v1554_v62 = vld [vmem:[%s2189_s3 + $0x4] ss:$8 sps:$4 sm:$0xff]   ;;  %v1552_v0 = vld [vmem:[%s2189_s3] ss:$8 sps:$4 sm:$0xff]  }
  0x16   :  { %v1557_v63 = vld [vmem:[%s2189_s3 + $0x104] ss:$8 sps:$4 sm:$0xff]   ;;  %v1555_v1 = vld [vmem:[%s2189_s3 + $0x100] ss:$8 sps:$4 sm:$0xff]   ;;  %v1560_v2 = vld [vmem:[%s2189_s3 + $0xf4] ss:$8 sps:$4 sm:$0xff]  }
  0x17   :  { %260 = vmatpush1.bf16.msra.mxu0 %v1495_v23  ;;  %303 = vmatpush1.bf16.msra.mxu1 %v1496_v24  ;;  %v1563_v3 = vld [vmem:[%s2189_s3 + $0x1f4] ss:$8 sps:$4 sm:$0xff]   ;;  %v1558_v4 = vld [vmem:[%s2189_s3 + $0xf0] ss:$8 sps:$4 sm:$0xff]   ;;  %v1566_v6 = vld [vmem:[%s2189_s3 + $0xe4] ss:$8 sps:$4 sm:$0xff]  }
  0x18   :  { %261 = vmatprep.subr.bf16.mxu0 %v1497_v25  ;;  %304 = vmatprep.subr.bf16.mxu1 %v1499_v26  ;;  %v1561_v5 = vld [vmem:[%s2189_s3 + $0x1f0] ss:$8 sps:$4 sm:$0xff]   ;;  %v1569_v7 = vld [vmem:[%s2189_s3 + $0x1e4] ss:$8 sps:$4 sm:$0xff]   ;;  %v1564_v8 = vld [vmem:[%s2189_s3 + $0xe0] ss:$8 sps:$4 sm:$0xff]  }
  0x19   :  { %v1567_v9 = vld [vmem:[%s2189_s3 + $0x1e0] ss:$8 sps:$4 sm:$0xff]   ;;  %v1572_v10 = vld [vmem:[%s2189_s3 + $0xd4] ss:$8 sps:$4 sm:$0xff]   ;;  %v1570_v12 = vld [vmem:[%s2189_s3 + $0xd0] ss:$8 sps:$4 sm:$0xff]  }
  0x1a   :  { %v1575_v11 = vld [vmem:[%s2189_s3 + $0x1d4] ss:$8 sps:$4 sm:$0xff]   ;;  %v1573_v13 = vld [vmem:[%s2189_s3 + $0x1d0] ss:$8 sps:$4 sm:$0xff]   ;;  %v1578_v14 = vld [vmem:[%s2189_s3 + $0xc4] ss:$8 sps:$4 sm:$0xff]  }
  0x1b   :  { %262 = vmatpush1.bf16.msra.mxu0 %v1501_v27  ;;  %305 = vmatpush1.bf16.msra.mxu1 %v1502_v28  ;;  %v1581_v15 = vld [vmem:[%s2189_s3 + $0x1c4] ss:$8 sps:$4 sm:$0xff]   ;;  %v1576_v16 = vld [vmem:[%s2189_s3 + $0xc0] ss:$8 sps:$4 sm:$0xff]   ;;  %v1584_v18 = vld [vmem:[%s2189_s3 + $0xb4] ss:$8 sps:$4 sm:$0xff]  }
  0x1c   :  { %263 = vmatprep.subr.bf16.mxu0 %v1503_v29  ;;  %306 = vmatprep.subr.bf16.mxu1 %v1505_v30  ;;  %v1579_v17 = vld [vmem:[%s2189_s3 + $0x1c0] ss:$8 sps:$4 sm:$0xff]   ;;  %v1587_v19 = vld [vmem:[%s2189_s3 + $0x1b4] ss:$8 sps:$4 sm:$0xff]   ;;  %v1582_v20 = vld [vmem:[%s2189_s3 + $0xb0] ss:$8 sps:$4 sm:$0xff]  }
  0x1d   :  { %v1585_v21 = vld [vmem:[%s2189_s3 + $0x1b0] ss:$8 sps:$4 sm:$0xff]   ;;  %v1590_v22 = vld [vmem:[%s2189_s3 + $0xa4] ss:$8 sps:$4 sm:$0xff]   ;;  %v1588_v24 = vld [vmem:[%s2189_s3 + $0xa0] ss:$8 sps:$4 sm:$0xff]  }
  0x1e   :  { %v1593_v23 = vld [vmem:[%s2189_s3 + $0x1a4] ss:$8 sps:$4 sm:$0xff]   ;;  %v1591_v25 = vld [vmem:[%s2189_s3 + $0x1a0] ss:$8 sps:$4 sm:$0xff]   ;;  %v1596_v26 = vld [vmem:[%s2189_s3 + $0x94] ss:$8 sps:$4 sm:$0xff]  }
  0x1f   :  { %264 = vmatpush1.bf16.msra.mxu0 %v1507_v31  ;;  %307 = vmatpush1.bf16.msra.mxu1 %v1508_v32  ;;  %v1599_v27 = vld [vmem:[%s2189_s3 + $0x194] ss:$8 sps:$4 sm:$0xff]   ;;  %v1594_v28 = vld [vmem:[%s2189_s3 + $0x90] ss:$8 sps:$4 sm:$0xff]   ;;  %v1602_v30 = vld [vmem:[%s2189_s3 + $0x84] ss:$8 sps:$4 sm:$0xff]  }
  0x20   :  { %743 = vmatprep.subr.bf16.mxu0 %v1512_v33  ;;  %786 = vmatprep.subr.bf16.mxu1 %v1515_v34  ;;  %v1597_v29 = vld [vmem:[%s2189_s3 + $0x190] ss:$8 sps:$4 sm:$0xff]   ;;  %v1605_v31 = vld [vmem:[%s2189_s3 + $0x184] ss:$8 sps:$4 sm:$0xff]   ;;  %v1600_v32 = vld [vmem:[%s2189_s3 + $0x80] ss:$8 sps:$4 sm:$0xff]  }
  0x21   :  { %v1603_v33 = vld [vmem:[%s2189_s3 + $0x180] ss:$8 sps:$4 sm:$0xff]   ;;  %v1608_v34 = vld [vmem:[%s2190_s5 + $0xac] ss:$12 sps:$4 sm:$0xff]  }
  0x22   :  { %282 = vmatmul.mubr.bf16.vlgmr.msra.gmra.mxu0 %v1509_v35  ;;  %325 = vmatmul.mubr.bf16.vlgmr.msra.gmra.mxu1 %v1509_v35  ;;  %v1633_v35 = vld [vmem:[%s2190_s5 + $0x170] ss:$12 sps:$4 sm:$0xff]  }
  0x23   :  { %744 = vmatpush1.bf16.msra.mxu0 %v1510_v36  ;;  %787 = vmatpush1.bf16.msra.mxu1 %v1513_v37  ;;  %v63_v36 = vlaneseq }
  0x24   :  { %745 = vmatprep.subr.bf16.mxu0 %v1518_v38  ;;  %788 = vmatprep.subr.bf16.mxu1 %v1521_v39 }
  0x25   :  { %v2008_v37 = vshrl.u32 %v63_v36, 7  ;;  %v1635_v36 = vld [vmem:[%s2190_s5 + $0x150] ss:$12 sps:$4 sm:$0xff]  }
  0x27   :  { %746 = vmatpush1.bf16.msra.mxu0 %v1516_v40  ;;  %789 = vmatpush1.bf16.msra.mxu1 %v1519_v41  ;;  %v2011_v38 = vsub.s32 1, %v2008_v37  ;;  %v77_v39 = vsub.s32 3, %v2008_v37  ;;  %v2015_v40 = vsub.s32 0, %v2008_v37  ;;  %v73_v41 = vsub.s32 2, %v2008_v37 }
  0x28   :  { %747 = vmatprep.subr.bf16.mxu0 %v1524_v42  ;;  %790 = vmatprep.subr.bf16.mxu1 %v1527_v43  ;;  %v61_v42 = vld [vmem:[%s2191_s2] sm:$0xf] }
  0x2b   :  { %748 = vmatpush1.bf16.msra.mxu0 %v1522_v44  ;;  %791 = vmatpush1.bf16.msra.mxu1 %v1525_v45  ;;  %v70_v45 = vrot.slane %v61_v42, %v2011_v38 }
  0x2c   :  { %749 = vmatprep.subr.bf16.mxu0 %v1530_v46  ;;  %792 = vmatprep.subr.bf16.mxu1 %v1533_v47  ;;  %v78_v46 = vrot.slane %v61_v42, %v77_v39  ;;  %v66_v47 = vrot.slane %v61_v42, %v2015_v40  ;;  %v1642_v39 = vld [vmem:[%s2190_s5 + $0x13c] ss:$12 sps:$4 sm:$0xff]  }
  0x2f   :  { %750 = vmatpush1.bf16.msra.mxu0 %v1528_v48  ;;  %793 = vmatpush1.bf16.msra.mxu1 %v1531_v49  ;;  %v74_v48 = vrot.slane %v61_v42, %v73_v41  ;;  %v1640_v42 = vld [vmem:[%s2190_s5 + $0x138] ss:$12 sps:$4 sm:$0xff]  }
  0x30   :  { %751 = vmatprep.subr.bf16.mxu0 %v1536_v50  ;;  %794 = vmatprep.subr.bf16.mxu1 %v1539_v51 }
  0x33   :  { %752 = vmatpush1.bf16.msra.mxu0 %v1534_v52  ;;  %795 = vmatpush1.bf16.msra.mxu1 %v1537_v53 }
  0x34   :  { %753 = vmatprep.subr.bf16.mxu0 %v1542_v54  ;;  %796 = vmatprep.subr.bf16.mxu1 %v1545_v55 }
  0x37   :  { %754 = vmatpush1.bf16.msra.mxu0 %v1540_v56  ;;  %797 = vmatpush1.bf16.msra.mxu1 %v1543_v57 }
  0x38   :  { %755 = vmatprep.subr.bf16.mxu0 %v1548_v58  ;;  %798 = vmatprep.subr.bf16.mxu1 %v1551_v59 }
  0x3b   :  { %756 = vmatpush1.bf16.msra.mxu0 %v1546_v60  ;;  %799 = vmatpush1.bf16.msra.mxu1 %v1549_v61 }
  0x3c   :  { %757 = vmatprep.subr.bf16.mxu0 %v1554_v62  ;;  %800 = vmatprep.subr.bf16.mxu1 %v1557_v63 }
  0x3f   :  { %758 = vmatpush1.bf16.msra.mxu0 %v1552_v0  ;;  %801 = vmatpush1.bf16.msra.mxu1 %v1555_v1 }
  0x40   :  { %759 = vmatprep.subr.bf16.mxu0 %v1560_v2  ;;  %802 = vmatprep.subr.bf16.mxu1 %v1563_v3 }
  0x43   :  { %760 = vmatpush2.bf16.msra.mxu0 %v1558_v4  ;;  %803 = vmatpush2.bf16.msra.mxu1 %v1561_v5 }
  0x44   :  { %761 = vmatprep.subr.bf16.mxu0 %v1566_v6  ;;  %804 = vmatprep.subr.bf16.mxu1 %v1569_v7 }
  0x47   :  { %762 = vmatpush2.bf16.msra.mxu0 %v1564_v8  ;;  %805 = vmatpush2.bf16.msra.mxu1 %v1567_v9  ;;  %v1606_v9 = vld [vmem:[%s2190_s5 + $0xa8] ss:$12 sps:$4 sm:$0xff]  }
  0x48   :  { %763 = vmatprep.subr.bf16.mxu0 %v1572_v10  ;;  %806 = vmatprep.subr.bf16.mxu1 %v1575_v11  ;;  %v1634_v10 = vld [vmem:[%s2190_s5 + $0xb0] ss:$12 sps:$4 sm:$0xff]  }
  0x4b   :  { %764 = vmatpush2.bf16.msra.mxu0 %v1570_v12  ;;  %807 = vmatpush2.bf16.msra.mxu1 %v1573_v13  ;;  %v1611_v13 = vld [vmem:[%s2190_s5 + $0x94] ss:$12 sps:$4 sm:$0xff]  }
  0x4c   :  { %765 = vmatprep.subr.bf16.mxu0 %v1578_v14  ;;  %808 = vmatprep.subr.bf16.mxu1 %v1581_v15  ;;  %v1638_v14 = vld [vmem:[%s2190_s5 + $0x158] ss:$12 sps:$4 sm:$0xff]   ;;  %v1609_v15 = vld [vmem:[%s2190_s5 + $0x90] ss:$12 sps:$4 sm:$0xff]  }
  0x4f   :  { %766 = vmatpush2.bf16.msra.mxu0 %v1576_v16  ;;  %809 = vmatpush2.bf16.msra.mxu1 %v1579_v17  ;;  %v1639_v16 = vld [vmem:[%s2190_s5 + $0x98] ss:$12 sps:$4 sm:$0xff]   ;;  %v1614_v17 = vld [vmem:[%s2190_s5 + $0x7c] ss:$12 sps:$4 sm:$0xff]  }
  0x50   :  { %767 = vmatprep.subr.bf16.mxu0 %v1584_v18  ;;  %810 = vmatprep.subr.bf16.mxu1 %v1587_v19  ;;  %v1643_v18 = vld [vmem:[%s2190_s5 + $0x140] ss:$12 sps:$4 sm:$0xff]   ;;  %v1612_v19 = vld [vmem:[%s2190_s5 + $0x78] ss:$12 sps:$4 sm:$0xff]  }
  0x53   :  { %768 = vmatpush2.bf16.msra.mxu0 %v1582_v20  ;;  %811 = vmatpush2.bf16.msra.mxu1 %v1585_v21  ;;  %v1644_v20 = vld [vmem:[%s2190_s5 + $0x80] ss:$12 sps:$4 sm:$0xff]   ;;  %v1617_v21 = vld [vmem:[%s2190_s5 + $0x64] ss:$12 sps:$4 sm:$0xff]  }
  0x54   :  { %769 = vmatprep.subr.bf16.mxu0 %v1590_v22  ;;  %812 = vmatprep.subr.bf16.mxu1 %v1593_v23  ;;  %v1648_v22 = vld [vmem:[%s2190_s5 + $0x128] ss:$12 sps:$4 sm:$0xff]   ;;  %v1615_v23 = vld [vmem:[%s2190_s5 + $0x60] ss:$12 sps:$4 sm:$0xff]  }
  0x57   :  { %770 = vmatpush2.bf16.msra.mxu0 %v1588_v24  ;;  %813 = vmatpush2.bf16.msra.mxu1 %v1591_v25  ;;  %v1649_v24 = vld [vmem:[%s2190_s5 + $0x68] ss:$12 sps:$4 sm:$0xff]   ;;  %v1620_v25 = vld [vmem:[%s2190_s5 + $0x4c] ss:$12 sps:$4 sm:$0xff]  }
  0x58   :  { %771 = vmatprep.subr.bf16.mxu0 %v1596_v26  ;;  %814 = vmatprep.subr.bf16.mxu1 %v1599_v27  ;;  %v1618_v26 = vld [vmem:[%s2190_s5 + $0x48] ss:$12 sps:$4 sm:$0xff]  }
  0x59   :  { %v1623_v27 = vld [vmem:[%s2190_s5 + $0x34] ss:$12 sps:$4 sm:$0xff]  }
  0x5b   :  { %772 = vmatpush2.bf16.msra.mxu0 %v1594_v28  ;;  %815 = vmatpush2.bf16.msra.mxu1 %v1597_v29  ;;  %v1621_v28 = vld [vmem:[%s2190_s5 + $0x30] ss:$12 sps:$4 sm:$0xff]  }
  0x5c   :  { %773 = vmatprep.subr.bf16.mxu0 %v1602_v30  ;;  %816 = vmatprep.subr.bf16.mxu1 %v1605_v31  ;;  %v1626_v29 = vld [vmem:[%s2190_s5 + $0x1c] ss:$12 sps:$4 sm:$0xff]   ;;  %v1624_v30 = vld [vmem:[%s2190_s5 + $0x18] ss:$12 sps:$4 sm:$0xff]  }
  0x5d   :  { %v1629_v31 = vld [vmem:[%s2190_s5 + $0x4] ss:$12 sps:$4 sm:$0xff]  }
  0x5f   :  { %774 = vmatpush2.bf16.msra.mxu0 %v1600_v32  ;;  %817 = vmatpush2.bf16.msra.mxu1 %v1603_v33  ;;  %v1627_v32 = vld [vmem:[%s2190_s5] ss:$12 sps:$4 sm:$0xff]  }
  0x60   :  { %1172 = vmatprep.subr.bf16.mxu0 %v1608_v34  ;;  %1438 = vmatprep.subr.bf16.mxu1 %v1633_v35  ;;  %v1632_v33 = vld [vmem:[%s2190_s5 + $0x16c] ss:$12 sps:$4 sm:$0xff]   ;;  %v1630_v34 = vld [vmem:[%s2190_s5 + $0x168] ss:$12 sps:$4 sm:$0xff]  }
  0x61   :  { %v1637_v35 = vld [vmem:[%s2190_s5 + $0x154] ss:$12 sps:$4 sm:$0xff]  }
  0xe2   :  { %v283_v43 = vpop.f32.mrf.mxu0  ;;  %v326_v44 = vpop.f32.mrf.mxu1 }
  0xe3   :  { %v284_v57 = vadd.f32 %v283_v43, %v66_v47  ;;  %v327_v58 = vadd.f32 %v326_v44, %v74_v48  ;;  %v1647_v43 = vld [vmem:[%s2190_s5 + $0x124] ss:$12 sps:$4 sm:$0xff]   ;;  %v1645_v44 = vld [vmem:[%s2190_s5 + $0x120] ss:$12 sps:$4 sm:$0xff]  }
  0xe4   :  { %v285_v49 = vpop.f32.mrf.mxu0  ;;  %v328_v50 = vpop.f32.mrf.mxu1 }
  0xe5   :  { %v286_v53 = vadd.f32 %v285_v49, %v70_v45  ;;  %v329_v54 = vadd.f32 %v328_v50, %v78_v46  ;;  %v335_v5 = vmax.f32 %v284_v57, 0.0  ;;  %v337_v6 = vmax.f32 %v327_v58, 0.0  ;;  %v1657_v49 = vld [vmem:[%s2190_s5 + $0xf4] ss:$12 sps:$4 sm:$0xff]   ;;  %v1658_v50 = vld [vmem:[%s2190_s5 + $0xf8] ss:$12 sps:$4 sm:$0xff]  }
  0xe6   :  { %v287_v51 = vpop.f32.mrf.mxu0  ;;  %v330_v52 = vpop.f32.mrf.mxu1  ;;  %v1667_v57 = vld [vmem:[%s2190_s5 + $0xc4] ss:$12 sps:$4 sm:$0xff]   ;;  %v1668_v58 = vld [vmem:[%s2190_s5 + $0xc8] ss:$12 sps:$4 sm:$0xff]  }
  0xe7   :  { %v288_v55 = vadd.f32 %v287_v51, %v66_v47  ;;  %v331_v56 = vadd.f32 %v330_v52, %v74_v48  ;;  %v336_v1 = vmax.f32 %v286_v53, 0.0  ;;  %v338_v2 = vmax.f32 %v329_v54, 0.0  ;;  %v1650_v47 = vld [vmem:[%s2190_s5 + $0x108] ss:$12 sps:$4 sm:$0xff]   ;;  %v1654_v48 = vld [vmem:[%s2190_s5 + $0x50] ss:$12 sps:$4 sm:$0xff]  }
  0xe8   :  { %v289_v59 = vpop.f32.mrf.mxu0  ;;  %v332_v60 = vpop.f32.mrf.mxu1  ;;  %v1655_v51 = vld [vmem:[%s2190_s5 + $0xf0] ss:$12 sps:$4 sm:$0xff]   ;;  %v1659_v52 = vld [vmem:[%s2190_s5 + $0x38] ss:$12 sps:$4 sm:$0xff]   ;;  %v1663_v54 = vld [vmem:[%s2190_s5 + $0xe0] ss:$12 sps:$4 sm:$0xff]  }
  0xe9   :  { %v290_v61 = vadd.f32 %v289_v59, %v70_v45  ;;  %v333_v62 = vadd.f32 %v332_v60, %v78_v46  ;;  %v339_v63 = vmax.f32 %v288_v55, 0.0  ;;  %v341_v0 = vmax.f32 %v331_v56, 0.0  ;;  %v1652_v45 = vld [vmem:[%s2190_s5 + $0x10c] ss:$12 sps:$4 sm:$0xff]   ;;  %v1653_v46 = vld [vmem:[%s2190_s5 + $0x110] ss:$12 sps:$4 sm:$0xff]  }
  0xea   :  { %v1662_v53 = vld [vmem:[%s2190_s5 + $0xdc] ss:$12 sps:$4 sm:$0xff]   ;;  %v1660_v55 = vld [vmem:[%s2190_s5 + $0xd8] ss:$12 sps:$4 sm:$0xff]   ;;  %v1664_v56 = vld [vmem:[%s2190_s5 + $0x20] ss:$12 sps:$4 sm:$0xff]  }
  0xeb   :  { %v340_v3 = vmax.f32 %v290_v61, 0.0  ;;  %v342_v4 = vmax.f32 %v333_v62, 0.0  ;;  %v343_v11 = vpack.c.bf16 %v339_v63, %v335_v5  ;;  %v345_v12 = vpack.c.bf16 %v341_v0, %v337_v6  ;;  %v1665_v59 = vld [vmem:[%s2190_s5 + $0xc0] ss:$12 sps:$4 sm:$0xff]   ;;  %v1669_v60 = vld [vmem:[%s2190_s5 + $0x8] ss:$12 sps:$4 sm:$0xff]  }
  0xec   :  { %v411_v61 = vld [vmem:[%s2192_s4] sm:$0x3] }
  0xed   :  { %v344_v7 = vpack.c.bf16 %v340_v3, %v336_v1  ;;  %v346_v8 = vpack.c.bf16 %v342_v4, %v338_v2  ;;  %v420_v62 = vrot.slane %v411_v61, %v2011_v38  ;;  %v416_v63 = vrot.slane %v411_v61, %v2015_v40 }
  0xef   :  { %775 = vmatprep.mubr.bf16.mxu0 %v344_v7  ;;  %818 = vmatprep.mubr.bf16.mxu1 %v346_v8 }
  0xf0   :  { %776 = vmatmul.mubr.bf16.vlgmr.msra.gmra.mxu0 %v343_v11  ;;  %819 = vmatmul.mubr.bf16.vlgmr.msra.gmra.mxu1 %v345_v12 }
  0xf1   :  { %1173 = vmatpush1.bf16.msra.mxu0 %v1606_v9  ;;  %1439 = vmatpush3.bf16.msra.mxu1 %v1634_v10 }
  0xf2   :  { %1174 = vmatprep.subr.bf16.mxu0 %v1611_v13  ;;  %1440 = vmatprep.subr.bf16.mxu1 %v1638_v14 }
  0xf5   :  { %1175 = vmatpush1.bf16.msra.mxu0 %v1609_v15  ;;  %1441 = vmatpush3.bf16.msra.mxu1 %v1639_v16 }
  0xf6   :  { %1176 = vmatprep.subr.bf16.mxu0 %v1614_v17  ;;  %1442 = vmatprep.subr.bf16.mxu1 %v1643_v18 }
  0xf9   :  { %1177 = vmatpush1.bf16.msra.mxu0 %v1612_v19  ;;  %1443 = vmatpush3.bf16.msra.mxu1 %v1644_v20 }
  0xfa   :  { %1178 = vmatprep.subr.bf16.mxu0 %v1617_v21  ;;  %1444 = vmatprep.subr.bf16.mxu1 %v1648_v22  ;;  %v899_v22 = vld [vmem:[%s2193_s6] sm:$0x7] }
  0xfd   :  { %1179 = vmatpush1.bf16.msra.mxu0 %v1615_v23  ;;  %1445 = vmatpush3.bf16.msra.mxu1 %v1649_v24  ;;  %v904_v23 = vrot.slane %v899_v22, %v2015_v40  ;;  %v908_v24 = vrot.slane %v899_v22, %v2011_v38 }
  0xfe   :  { %1180 = vmatprep.subr.bf16.mxu0 %v1620_v25  ;;  %1446 = vmatprep.subr.bf16.mxu1 %v1653_v46 }
 0x101   :  { %1181 = vmatpush1.bf16.msra.mxu0 %v1618_v26  ;;  %1447 = vmatpush3.bf16.msra.mxu1 %v1654_v48 }
 0x102   :  { %1182 = vmatprep.subr.bf16.mxu0 %v1623_v27  ;;  %1448 = vmatprep.subr.bf16.mxu1 %v1658_v50  ;;  %v912_v27 = vrot.slane %v899_v22, %v73_v41 }
 0x105   :  { %1183 = vmatpush1.bf16.msra.mxu0 %v1621_v28  ;;  %1449 = vmatpush3.bf16.msra.mxu1 %v1659_v52 }
 0x106   :  { %1184 = vmatprep.subr.bf16.mxu0 %v1626_v29  ;;  %1450 = vmatprep.subr.bf16.mxu1 %v1663_v54 }
 0x109   :  { %1185 = vmatpush1.bf16.msra.mxu0 %v1624_v30  ;;  %1451 = vmatpush3.bf16.msra.mxu1 %v1664_v56 }
 0x10a   :  { %1186 = vmatprep.subr.bf16.mxu0 %v1629_v31  ;;  %1452 = vmatprep.subr.bf16.mxu1 %v1668_v58 }
 0x10d   :  { %1187 = vmatpush1.bf16.msra.mxu0 %v1627_v32  ;;  %1453 = vmatpush3.bf16.msra.mxu1 %v1669_v60 }
 0x10e   :  { %1188 = vmatprep.subr.bf16.mxu0 %v1632_v33 }
 0x111   :  { %1189 = vmatpush2.bf16.msra.mxu0 %v1630_v34 }
 0x112   :  { %1190 = vmatprep.subr.bf16.mxu0 %v1637_v35 }
 0x115   :  { %1191 = vmatpush2.bf16.msra.mxu0 %v1635_v36 }
 0x116   :  { %1192 = vmatprep.subr.bf16.mxu0 %v1642_v39 }
 0x119   :  { %1193 = vmatpush2.bf16.msra.mxu0 %v1640_v42 }
 0x11a   :  { %1194 = vmatprep.subr.bf16.mxu0 %v1647_v43 }
 0x11d   :  { %1195 = vmatpush2.bf16.msra.mxu0 %v1645_v44 }
 0x11e   :  { %1196 = vmatprep.subr.bf16.mxu0 %v1652_v45 }
 0x121   :  { %1197 = vmatpush2.bf16.msra.mxu0 %v1650_v47 }
 0x122   :  { %1198 = vmatprep.subr.bf16.mxu0 %v1657_v49 }
 0x125   :  { %1199 = vmatpush2.bf16.msra.mxu0 %v1655_v51 }
 0x126   :  { %1200 = vmatprep.subr.bf16.mxu0 %v1662_v53 }
 0x129   :  { %1201 = vmatpush2.bf16.msra.mxu0 %v1660_v55 }
 0x12a   :  { %1202 = vmatprep.subr.bf16.mxu0 %v1667_v57 }
 0x12d   :  { %1203 = vmatpush2.bf16.msra.mxu0 %v1665_v59 }
 0x1b0   :  { %v777_v0 = vpop.f32.mrf.mxu0  ;;  %v820_v1 = vpop.f32.mrf.mxu1 }
 0x1b1   :  { %v778_v5 = vadd.f32 %v777_v0, %v416_v63 }
 0x1b2   :  { %v779_v2 = vpop.f32.mrf.mxu0  ;;  %v822_v3 = vpop.f32.mrf.mxu1 }
 0x1b3   :  { %v780_v4 = vadd.f32 %v779_v2, %v420_v62  ;;  %v821_v13 = vadd.f32 %v820_v1, %v778_v5 }
 0x1b4   :  { %v781_v6 = vpop.f32.mrf.mxu0  ;;  %v824_v7 = vpop.f32.mrf.mxu1 }
 0x1b5   :  { %v782_v8 = vadd.f32 %v781_v6, %v416_v63  ;;  %v823_v10 = vadd.f32 %v822_v3, %v780_v4  ;;  %v829_v19 = vmax.f32 %v821_v13, 0.0 }
 0x1b6   :  { %v783_v9 = vpop.f32.mrf.mxu0  ;;  %v826_v14 = vpop.f32.mrf.mxu1 }
 0x1b7   :  { %v825_v11 = vadd.f32 %v824_v7, %v782_v8  ;;  %v784_v12 = vadd.f32 %v783_v9, %v420_v62  ;;  %v830_v17 = vmax.f32 %v823_v10, 0.0 }
 0x1b9   :  { %v827_v15 = vadd.f32 %v826_v14, %v784_v12  ;;  %v831_v16 = vmax.f32 %v825_v11, 0.0 }
 0x1bb   :  { %v832_v18 = vmax.f32 %v827_v15, 0.0  ;;  %v833_v21 = vpack.c.bf16 %v831_v16, %v829_v19 }
 0x1bd   :  { %v834_v20 = vpack.c.bf16 %v832_v18, %v830_v17 }
 0x1bf   :  { %1204 = vmatprep.mubr.bf16.mxu0 %v834_v20  ;;  %1247 = vmatprep.mubr.bf16.mxu1 %v834_v20 }
 0x1c0   :  { %1205 = vmatmul.mubr.bf16.vlgmr.msra.gmra.mxu0 %v833_v21  ;;  %1248 = vmatmul.mubr.bf16.vlgmr.msra.gmra.mxu1 %v833_v21 }
 0x280   :  { %v1206_v25 = vpop.f32.mrf.mxu0  ;;  %v1454_v26 = vpop.f32.mrf.mxu1 }
 0x281   :  { %v1207_v30 = vadd.f32 %v1206_v25, %v904_v23 }
 0x282   :  { %v1208_v28 = vpop.f32.mrf.mxu0  ;;  %v1455_v29 = vpop.f32.mrf.mxu1 }
 0x283   :  { %v1209_v31 = vadd.f32 %v1208_v28, %v908_v24  ;;  %v1456_v32 = vadd.f32 %v1455_v29, %v1454_v26 }
 0x284   :  { %v1210_v33 = vpop.f32.mrf.mxu0  ;;  %v1457_v34 = vpop.f32.mrf.mxu1 }
 0x285   :  { %v1434_v35 = vpack.c.bf16 %v1209_v31, %v1207_v30  ;;  %v1250_v36 = vadd.f32 %v1456_v32, %v912_v27  ;;  %v1211_v40 = vadd.f32 %v1210_v33, %v904_v23 }
 0x286   :  { %v1212_v39 = vpop.f32.mrf.mxu0  ;;  %v1458_v42 = vpop.f32.mrf.mxu1 }
 0x287   :  { %1276 = vst [vmem:[%s2194_s7] sm:$0xff] %v1434_v35  ;;  %v1435_v38 = vpack.c.bf16 %v1250_v36, %v1250_v36  ;;  %v1213_v37 = vadd.f32 %v1212_v39, %v908_v24  ;;  %v1459_v41 = vadd.f32 %v1458_v42, %v1457_v34 }
 0x289   :  { %1278 = vst.msk [vmem:[%s2194_s7 + $0x8] sm:$0xf] %vm1277_vm0, %v1435_v38  ;;  %v1436_v43 = vpack.c.bf16 %v1213_v37, %v1211_v40  ;;  %v1253_v44 = vadd.f32 %v1459_v41, %v912_v27 }
 0x28b   :  { %1279 = vst [vmem:[%s2194_s7 + $0xc] sm:$0xff] %v1436_v43  ;;  %v1437_v45 = vpack.c.bf16 %v1253_v44, %v1253_v44 }
 0x28d   :  { %1280 = vst.msk [vmem:[%s2194_s7 + $0x14] sm:$0xf] %vm1277_vm0, %v1437_v45 }

</bundles_post_ra>
